<compile_context>
chip_gen: v6e
topology: v6e:2x2x1
jax: 0.10.0
libtpu: 0.0.40
codegen_flags: <defaults>
</compile_context>

<pallas_src>
import math

import jax
import jax.numpy as jnp
from jax.experimental import pallas as pl
from jax.experimental.pallas import tpu as pltpu


LANE = 128                            # lane width; feature/hidden dims padded to this
VMEM_BUDGET = 24 * 1024 * 1024        # planning budget for per-kernel resident tiles
VMEM_LIMIT = 40 * 1024 * 1024         # scoped-VMEM limit handed to Mosaic (safe on v5e/v6e/v7x)


def _round_up(v, m):
    return (v + m - 1) // m * m


def _pick_row_tile(n_pad, ok, candidates=(512, 256, 128)):
    """Largest row tile dividing n_pad that passes ok(); prefer >= 2 grid steps
    so the 'parallel' axis keeps both v7x TensorCores busy."""
    fits = [t for t in candidates if n_pad % t == 0 and ok(t)]
    if not fits:
        return None
    multi = [t for t in fits if n_pad // t >= 2]
    return (multi or fits)[0]


# ---------------------------------------------------------------------------
# Kernel A: h = x @ Wt + b   (row-tiled linear; Wt is pre-transposed [in, out])
# ---------------------------------------------------------------------------
def _linear_kernel(x_ref, wt_ref, b_ref, h_ref):
    acc = jnp.dot(x_ref[...], wt_ref[...], preferred_element_type=jnp.float32)
    h_ref[...] = (acc + b_ref[...]).astype(h_ref.dtype)   # bf16 for the spmm


def _linear(x_bf16, wt_bf16, b_f32):
    n_pad, f_pad = x_bf16.shape
    o_pad = wt_bf16.shape[1]

    def ok(tm):
        vmem = (2 * tm * f_pad * 2        # x tile, double-buffered bf16
                + 2 * f_pad * o_pad * 2   # resident weights (double-buffer headroom)
                + 2 * tm * o_pad * 2      # h output tile, double-buffered bf16
                + 2 * o_pad * 4)          # bias
        return vmem <= VMEM_BUDGET

    tm = _pick_row_tile(n_pad, ok) or 128
    return pl.pallas_call(
        _linear_kernel,
        out_shape=jax.ShapeDtypeStruct((n_pad, o_pad), jnp.bfloat16),
        grid_spec=pltpu.PrefetchScalarGridSpec(
            num_scalar_prefetch=0,
            grid=(n_pad // tm,),
            in_specs=[
                pl.BlockSpec((tm, f_pad), lambda i: (i, 0)),
                pl.BlockSpec((f_pad, o_pad), lambda i: (0, 0)),
                pl.BlockSpec((1, o_pad), lambda i: (0, 0)),
            ],
            out_specs=pl.BlockSpec((tm, o_pad), lambda i: (i, 0)),
        ),
        compiler_params=pltpu.CompilerParams(
            dimension_semantics=("parallel",),
            vmem_limit_bytes=VMEM_LIMIT),
    )(x_bf16, wt_bf16, b_f32)


# ---------------------------------------------------------------------------
# Kernel B: out = elu(adj @ h)
#   Main path : h fully VMEM-resident, single streaming pass over adj rows.
#   Fallback  : large-tile K-reduction when the adj row slab would blow VMEM.
# ---------------------------------------------------------------------------
def _elu(z):
    # ELU(alpha=1); clamp the exp argument at 0 so the EUP never sees +inf.
    return jnp.where(z > 0.0, z, jnp.exp(jnp.minimum(z, 0.0)) - 1.0)


def _spmm_elu_resident_kernel(adj_ref, h_ref, o_ref):
    z = jnp.dot(adj_ref[...], h_ref[...], preferred_element_type=jnp.float32)
    o_ref[...] = _elu(z).astype(o_ref.dtype)


def _spmm_elu_reduce_kernel(adj_ref, h_ref, o_ref, acc_ref):
    k = pl.program_id(1)

    @pl.when(k == 0)
    def _():
        acc_ref[...] = jnp.zeros_like(acc_ref)

    acc_ref[...] += jnp.dot(adj_ref[...], h_ref[...],
                            preferred_element_type=jnp.float32)

    @pl.when(k == pl.num_programs(1) - 1)
    def _():
        o_ref[...] = _elu(acc_ref[...]).astype(o_ref.dtype)


def _spmm_elu(adj_bf16, h_bf16, out_dtype):
    n_pad = adj_bf16.shape[0]
    o_pad = h_bf16.shape[1]
    out_sz = jnp.dtype(out_dtype).itemsize
    h_bytes = n_pad * o_pad * 2

    def ok_resident(tm):
        vmem = (2 * tm * n_pad * 2        # adj row slab, double-buffered bf16
                + 2 * h_bytes             # resident h (double-buffer headroom)
                + 2 * tm * o_pad * out_sz)
        return vmem <= VMEM_BUDGET

    tm = _pick_row_tile(n_pad, ok_resident)
    if tm is not None:
        # Resident-h variant: no K grid axis, no accumulator scratch, no h re-reads.
        return pl.pallas_call(
            _spmm_elu_resident_kernel,
            out_shape=jax.ShapeDtypeStruct((n_pad, o_pad), out_dtype),
            grid_spec=pltpu.PrefetchScalarGridSpec(
                num_scalar_prefetch=0,
                grid=(n_pad // tm,),
                in_specs=[
                    pl.BlockSpec((tm, n_pad), lambda i: (i, 0)),
                    pl.BlockSpec((n_pad, o_pad), lambda i: (0, 0)),
                ],
                out_specs=pl.BlockSpec((tm, o_pad), lambda i: (i, 0)),
            ),
            compiler_params=pltpu.CompilerParams(
                dimension_semantics=("parallel",),
                vmem_limit_bytes=VMEM_LIMIT),
        )(adj_bf16, h_bf16)

    # Fallback for very large node counts: tiled K reduction with large tiles.
    # (Keeps an f32 accumulator scratch because the output may be bf16.)
    tk = next(t for t in (2048, 1024, 512, 256, 128) if n_pad % t == 0)

    def ok_reduce(tm_):
        vmem = (2 * tm_ * tk * 2 + 2 * tk * o_pad * 2
                + 2 * tm_ * o_pad * out_sz + tm_ * o_pad * 4)
        return vmem <= VMEM_BUDGET

    tm = _pick_row_tile(n_pad, ok_reduce) or 128
    return pl.pallas_call(
        _spmm_elu_reduce_kernel,
        out_shape=jax.ShapeDtypeStruct((n_pad, o_pad), out_dtype),
        grid_spec=pltpu.PrefetchScalarGridSpec(
            num_scalar_prefetch=0,
            grid=(n_pad // tm, n_pad // tk),
            in_specs=[
                pl.BlockSpec((tm, tk), lambda i, k: (i, k)),
                pl.BlockSpec((tk, o_pad), lambda i, k: (k, 0)),
            ],
            out_specs=pl.BlockSpec((tm, o_pad), lambda i, k: (i, 0)),
            scratch_shapes=[pltpu.VMEM((tm, o_pad), jnp.float32)],
        ),
        compiler_params=pltpu.CompilerParams(
            dimension_semantics=("parallel", "arbitrary"),
            vmem_limit_bytes=VMEM_LIMIT),
    )(adj_bf16, h_bf16)


# ---------------------------------------------------------------------------
# Model wrapper (jitted: padding / cast plumbing fuses, no per-op dispatch)
# ---------------------------------------------------------------------------
def init_linear_params(key, in_dim, out_dim):
    # Mimics PyTorch nn.Linear default init (uniform +/- 1/sqrt(in_dim)).
    kw, kb = jax.random.split(key)
    bound = 1.0 / math.sqrt(in_dim)
    w = jax.random.uniform(kw, (out_dim, in_dim), jnp.float32, -bound, bound)
    b = jax.random.uniform(kb, (out_dim,), jnp.float32, -bound, bound)
    return w, b


@jax.jit
def gcn_forward(x, adjs, params):
    """x: [N, n_feat] f32; adjs: list of [N, N] f32; params: list of (W[out,in], b[out])."""
    n, n_feat = x.shape
    # Pad N so there are always >= 2 row tiles of 128 (keeps both v7x TCs busy).
    n_pad = max(_round_up(n, 256), 256)
    num_layers = len(params)

    # Pre-pad / pre-cast everything ONCE (zero padding is exact here).
    f_pad0 = _round_up(n_feat, LANE)
    xp = jnp.zeros((n_pad, f_pad0), jnp.bfloat16).at[:n, :n_feat].set(
        x.astype(jnp.bfloat16))
    adjs_p = [jnp.zeros((n_pad, n_pad), jnp.bfloat16).at[:n, :n].set(
        a.astype(jnp.bfloat16)) for a in adjs]

    z = None
    for idx, ((w, b), adj_p) in enumerate(zip(params, adjs_p)):
        out_dim, in_dim = w.shape
        f_pad = _round_up(in_dim, LANE)
        o_pad = _round_up(out_dim, LANE)
        assert xp.shape == (n_pad, f_pad)

        # Pre-transpose + zero-pad parameters (layout plumbing, fused by XLA).
        wt = jnp.zeros((f_pad, o_pad), jnp.bfloat16).at[:in_dim, :out_dim].set(
            w.T.astype(jnp.bfloat16))
        bp = jnp.zeros((1, o_pad), jnp.float32).at[0, :out_dim].set(b)

        h = _linear(xp, wt, bp)                       # bf16 [n_pad, o_pad]
        last = idx == num_layers - 1
        out_dtype = jnp.float32 if last else jnp.bfloat16
        z = _spmm_elu(adj_p, h, out_dtype)            # bf16 intermediates, f32 final

        # Dropout: eval-mode identity.
        xp = z                                        # already padded / bf16 for next layer

    return z[:n, :params[-1][0].shape[0]]


if __name__ == "__main__":
    key = jax.random.PRNGKey(0)

    # Small shapes consistent with GCN(n_feat, n_hid, layers, drop_out);
    # deliberately NOT multiples of 128 to exercise padding + final slicing.
    N = 200
    n_feat = 96
    n_hid = 64
    layers = 2

    k_x, k_adj, k_p = jax.random.split(key, 3)
    x = jax.random.normal(k_x, (N, n_feat), jnp.float32)

    # One row-normalized dense adjacency per layer (self loops included).
    adjs = []
    for ak in jax.random.split(k_adj, layers):
        a = (jax.random.uniform(ak, (N, N), jnp.float32) > 0.5).astype(jnp.float32)
        a = a + jnp.eye(N, dtype=jnp.float32)
        a = a / jnp.sum(a, axis=1, keepdims=True)
        adjs.append(a)

    # Parameters: layer 0 is (n_feat -> n_hid), the rest are (n_hid -> n_hid).
    param_keys = jax.random.split(k_p, layers)
    params = [init_linear_params(param_keys[0], n_feat, n_hid)]
    for i in range(1, layers):
        params.append(init_linear_params(param_keys[i], n_hid, n_hid))

    out = jax.block_until_ready(gcn_forward(x, adjs, params))
    assert out.shape == (N, n_hid)
    assert out.dtype == jnp.float32

    # Pure-JAX reference with the same bf16 input quantization / f32 accumulation.
    ref = x
    for (w, b), adj in zip(params, adjs):
        h = jnp.dot(ref.astype(jnp.bfloat16), w.T.astype(jnp.bfloat16),
                    preferred_element_type=jnp.float32) + b[None, :]
        z = jnp.dot(adj.astype(jnp.bfloat16), h.astype(jnp.bfloat16),
                    preferred_element_type=jnp.float32)
        ref = jax.nn.elu(z)

    max_diff = jnp.max(jnp.abs(out - ref))
    assert jnp.allclose(out, ref, atol=1e-2, rtol=1e-2), f"max|diff|={max_diff}"

    print("KERNEL_OK")
</pallas_src>

<mosaic_0001>
module attributes {stable_mosaic.version = 11 : i64} {
  func.func @_linear_kernel(%arg0: i32, %arg1: memref<128x128xbf16, #tpu.memory_space<vmem>>, %arg2: memref<128x128xbf16, #tpu.memory_space<vmem>>, %arg3: memref<1x128xf32, #tpu.memory_space<vmem>>, %arg4: memref<128x128xbf16, #tpu.memory_space<vmem>>) attributes {dimension_semantics = [#tpu.dimension_semantics<parallel>], iteration_bounds = array<i64: 2>, scalar_prefetch = 0 : i64, scratch_operands = 0 : i64, tpu.core_type = #tpu.core_type<tc>, window_params = [{transform_indices = @transform_0, window_bounds = array<i64: 128, 128>}, {pipeline_mode = #tpu.pipeline_mode<synchronous>, transform_indices = @transform_1, window_bounds = array<i64: 128, 128>}, {pipeline_mode = #tpu.pipeline_mode<synchronous>, transform_indices = @transform_2, window_bounds = array<i64: 1, 128>}, {transform_indices = @transform_3, window_bounds = array<i64: 128, 128>}]} {
    %c0 = arith.constant 0 : index
    %c0_0 = arith.constant 0 : index
    %0 = vector.load %arg1[%c0, %c0_0] : memref<128x128xbf16, #tpu.memory_space<vmem>>, vector<128x128xbf16>
    %c0_1 = arith.constant 0 : index
    %c0_2 = arith.constant 0 : index
    %1 = vector.load %arg2[%c0_1, %c0_2] : memref<128x128xbf16, #tpu.memory_space<vmem>>, vector<128x128xbf16>
    %cst = arith.constant dense<0.000000e+00> : vector<128x128xf32>
    %2 = tpu.matmul %0, %1, %cst {dimension_numbers = #tpu.dot_dimension_numbers<[1], [0], [0], [1], [0, 0, 1, 1], [], []>} : vector<128x128xbf16>, vector<128x128xbf16>, vector<128x128xf32> -> vector<128x128xf32>
    %c0_3 = arith.constant 0 : index
    %c0_4 = arith.constant 0 : index
    %3 = vector.load %arg3[%c0_3, %c0_4] : memref<1x128xf32, #tpu.memory_space<vmem>>, vector<1x128xf32>
    %4 = vector.broadcast %3 : vector<1x128xf32> to vector<128x128xf32>
    %5 = arith.addf %2, %4 : vector<128x128xf32>
    %6 = arith.truncf %5 : vector<128x128xf32> to vector<128x128xbf16>
    %c0_5 = arith.constant 0 : index
    %c0_6 = arith.constant 0 : index
    %7 = vector.load %arg4[%c0_5, %c0_6] : memref<128x128xbf16, #tpu.memory_space<vmem>>, vector<128x128xbf16>
    tpu.vector_store %arg4[%c0_5, %c0_6], %6 {strides = array<i32>} : memref<128x128xbf16, #tpu.memory_space<vmem>>, vector<128x128xbf16>,
    return
  }
  func.func @transform_0(%arg0: i32) -> (i32, i32) {
    %c0_i32 = arith.constant 0 : i32
    %c0_i32_0 = arith.constant 0 : i32
    return %arg0, %c0_i32 : i32, i32
  }
  func.func @transform_1(%arg0: i32) -> (i32, i32) {
    %c0_i32 = arith.constant 0 : i32
    %c0_i32_0 = arith.constant 0 : i32
    %c0_i32_1 = arith.constant 0 : i32
    return %c0_i32, %c0_i32_0 : i32, i32
  }
  func.func @transform_2(%arg0: i32) -> (i32, i32) {
    %c0_i32 = arith.constant 0 : i32
    %c0_i32_0 = arith.constant 0 : i32
    %c0_i32_1 = arith.constant 0 : i32
    return %c0_i32, %c0_i32_0 : i32, i32
  }
  func.func @transform_3(%arg0: i32) -> (i32, i32) {
    %c0_i32 = arith.constant 0 : i32
    %c0_i32_0 = arith.constant 0 : i32
    return %arg0, %c0_i32 : i32, i32
  }
}

module attributes {stable_mosaic.version = 11 : i64} {
  func.func @_spmm_elu_resident_kernel(%arg0: i32, %arg1: memref<128x256xbf16, #tpu.memory_space<vmem>>, %arg2: memref<256x128xbf16, #tpu.memory_space<vmem>>, %arg3: memref<128x128xbf16, #tpu.memory_space<vmem>>) attributes {dimension_semantics = [#tpu.dimension_semantics<parallel>], iteration_bounds = array<i64: 2>, scalar_prefetch = 0 : i64, scratch_operands = 0 : i64, tpu.core_type = #tpu.core_type<tc>, window_params = [{transform_indices = @transform_0, window_bounds = array<i64: 128, 256>}, {pipeline_mode = #tpu.pipeline_mode<synchronous>, transform_indices = @transform_1, window_bounds = array<i64: 256, 128>}, {transform_indices = @transform_2, window_bounds = array<i64: 128, 128>}]} {
    %c0 = arith.constant 0 : index
    %c0_0 = arith.constant 0 : index
    %0 = vector.load %arg1[%c0, %c0_0] : memref<128x256xbf16, #tpu.memory_space<vmem>>, vector<128x256xbf16>
    %c0_1 = arith.constant 0 : index
    %c0_2 = arith.constant 0 : index
    %1 = vector.load %arg2[%c0_1, %c0_2] : memref<256x128xbf16, #tpu.memory_space<vmem>>, vector<256x128xbf16>
    %cst = arith.constant dense<0.000000e+00> : vector<128x128xf32>
    %2 = tpu.matmul %0, %1, %cst {dimension_numbers = #tpu.dot_dimension_numbers<[1], [0], [0], [1], [0, 0, 1, 1], [], []>} : vector<128x256xbf16>, vector<256x128xbf16>, vector<128x128xf32> -> vector<128x128xf32>
    %cst_3 = arith.constant 0.000000e+00 : f32
    %3 = vector.broadcast %cst_3 : f32 to vector<128x128xf32>
    %4 = arith.cmpf ogt, %2, %3 : vector<128x128xf32>
    %cst_4 = arith.constant 0.000000e+00 : f32
    %5 = vector.broadcast %cst_4 : f32 to vector<128x128xf32>
    %6 = arith.minimumf %2, %5 : vector<128x128xf32>
    %7 = math.exp %6 : vector<128x128xf32>
    %cst_5 = arith.constant 1.000000e+00 : f32
    %8 = vector.broadcast %cst_5 : f32 to vector<128x128xf32>
    %9 = arith.subf %7, %8 : vector<128x128xf32>
    %10 = arith.select %4, %2, %9 : vector<128x128xi1>, vector<128x128xf32>
    %11 = arith.truncf %10 : vector<128x128xf32> to vector<128x128xbf16>
    %c0_6 = arith.constant 0 : index
    %c0_7 = arith.constant 0 : index
    %12 = vector.load %arg3[%c0_6, %c0_7] : memref<128x128xbf16, #tpu.memory_space<vmem>>, vector<128x128xbf16>
    tpu.vector_store %arg3[%c0_6, %c0_7], %11 {strides = array<i32>} : memref<128x128xbf16, #tpu.memory_space<vmem>>, vector<128x128xbf16>,
    return
  }
  func.func @transform_0(%arg0: i32) -> (i32, i32) {
    %c0_i32 = arith.constant 0 : i32
    %c0_i32_0 = arith.constant 0 : i32
    return %arg0, %c0_i32 : i32, i32
  }
  func.func @transform_1(%arg0: i32) -> (i32, i32) {
    %c0_i32 = arith.constant 0 : i32
    %c0_i32_0 = arith.constant 0 : i32
    %c0_i32_1 = arith.constant 0 : i32
    return %c0_i32, %c0_i32_0 : i32, i32
  }
  func.func @transform_2(%arg0: i32) -> (i32, i32) {
    %c0_i32 = arith.constant 0 : i32
    %c0_i32_0 = arith.constant 0 : i32
    return %arg0, %c0_i32 : i32, i32
  }
}

module attributes {stable_mosaic.version = 11 : i64} {
  func.func @_spmm_elu_resident_kernel(%arg0: i32, %arg1: memref<128x256xbf16, #tpu.memory_space<vmem>>, %arg2: memref<256x128xbf16, #tpu.memory_space<vmem>>, %arg3: memref<128x128xf32, #tpu.memory_space<vmem>>) attributes {dimension_semantics = [#tpu.dimension_semantics<parallel>], iteration_bounds = array<i64: 2>, scalar_prefetch = 0 : i64, scratch_operands = 0 : i64, tpu.core_type = #tpu.core_type<tc>, window_params = [{transform_indices = @transform_0, window_bounds = array<i64: 128, 256>}, {pipeline_mode = #tpu.pipeline_mode<synchronous>, transform_indices = @transform_1, window_bounds = array<i64: 256, 128>}, {transform_indices = @transform_2, window_bounds = array<i64: 128, 128>}]} {
    %c0 = arith.constant 0 : index
    %c0_0 = arith.constant 0 : index
    %0 = vector.load %arg1[%c0, %c0_0] : memref<128x256xbf16, #tpu.memory_space<vmem>>, vector<128x256xbf16>
    %c0_1 = arith.constant 0 : index
    %c0_2 = arith.constant 0 : index
    %1 = vector.load %arg2[%c0_1, %c0_2] : memref<256x128xbf16, #tpu.memory_space<vmem>>, vector<256x128xbf16>
    %cst = arith.constant dense<0.000000e+00> : vector<128x128xf32>
    %2 = tpu.matmul %0, %1, %cst {dimension_numbers = #tpu.dot_dimension_numbers<[1], [0], [0], [1], [0, 0, 1, 1], [], []>} : vector<128x256xbf16>, vector<256x128xbf16>, vector<128x128xf32> -> vector<128x128xf32>
    %cst_3 = arith.constant 0.000000e+00 : f32
    %3 = vector.broadcast %cst_3 : f32 to vector<128x128xf32>
    %4 = arith.cmpf ogt, %2, %3 : vector<128x128xf32>
    %cst_4 = arith.constant 0.000000e+00 : f32
    %5 = vector.broadcast %cst_4 : f32 to vector<128x128xf32>
    %6 = arith.minimumf %2, %5 : vector<128x128xf32>
    %7 = math.exp %6 : vector<128x128xf32>
    %cst_5 = arith.constant 1.000000e+00 : f32
    %8 = vector.broadcast %cst_5 : f32 to vector<128x128xf32>
    %9 = arith.subf %7, %8 : vector<128x128xf32>
    %10 = arith.select %4, %2, %9 : vector<128x128xi1>, vector<128x128xf32>
    %c0_6 = arith.constant 0 : index
    %c0_7 = arith.constant 0 : index
    %11 = vector.load %arg3[%c0_6, %c0_7] : memref<128x128xf32, #tpu.memory_space<vmem>>, vector<128x128xf32>
    tpu.vector_store %arg3[%c0_6, %c0_7], %10 {strides = array<i32>} : memref<128x128xf32, #tpu.memory_space<vmem>>, vector<128x128xf32>,
    return
  }
  func.func @transform_0(%arg0: i32) -> (i32, i32) {
    %c0_i32 = arith.constant 0 : i32
    %c0_i32_0 = arith.constant 0 : i32
    return %arg0, %c0_i32 : i32, i32
  }
  func.func @transform_1(%arg0: i32) -> (i32, i32) {
    %c0_i32 = arith.constant 0 : i32
    %c0_i32_0 = arith.constant 0 : i32
    %c0_i32_1 = arith.constant 0 : i32
    return %c0_i32, %c0_i32_0 : i32, i32
  }
  func.func @transform_2(%arg0: i32) -> (i32, i32) {
    %c0_i32 = arith.constant 0 : i32
    %c0_i32_0 = arith.constant 0 : i32
    return %arg0, %c0_i32 : i32, i32
  }
}

</mosaic_0001>

<bundles_post_ra>
// kernel: gcn_forward.5
= control target key start
LH: loop header
LB: loop body
LE: loop exit
PB: predicated region body
PF: predicated region fallthrough
CT: control target
= control target key end

     0   :  { %s1027_s9 = smov 0   ;;  %s1208_s0 = inlined_call_operand.vmem [shape: bf16[256,256], index: 0, kind: input, shape index: {}]   ;;  %s1209_s1 = inlined_call_operand.vmem [shape: bf16[256,128], index: 1, kind: input, shape index: {}]   ;;  %s1210_s2 = inlined_call_operand.vmem [shape: bf16[256,128], index: 2, kind: output, shape index: {}]  }
   0x1 LB: > { %s704_s10 = sadd.s32 4294967295, %s1010_s9   ;;  %p708_p0 = scmp.ge.s32.totalorder %s1010_s9, 1  ;;  %s1010_s9 = sphi %s1027_s9, %s12_s9  }
   0x2   : > { %p114_p1 = scmp.lt.s32.totalorder %s1010_s9, 3 }
   0x4   : > { %p115_p2 = pnand %p708_p0, %p114_p1 }
   0x5   : > { %s709_s13 = sshll.u32 (!%p115_p2), %s704_s10, 4 }
   0x6   : > { %118 = sbr.rel (%p115_p2) target bundleno = 294 (0x126), region = 28  ;;  %p138_p3 = scmp.lt.s32.totalorder (!%p115_p2), %s709_s13, 31 }
   0xb   : > { %v932_v0 = vld [vmem:[%s1209_s1 + $0x78] sm:$0xff]   ;;  %v934_v2 = vld [vmem:[%s1209_s1 + $0x70] sm:$0xff]   ;;  %v936_v4 = vld [vmem:[%s1209_s1 + $0x68] sm:$0xff]   ;;  %s1212_s13 = smov (!%p138_p3, %s709_s13), 31 }
   0xc   : > { %v933_v1 = vld [vmem:[%s1209_s1 + $0x38] sm:$0xff]   ;;  %844 = vmatprep.subr.bf16.mxu0 %v932_v0  ;;  %908 = vmatprep.subr.bf16.mxu1 %v932_v0  ;;  %v935_v3 = vld [vmem:[%s1209_s1 + $0x30] sm:$0xff]   ;;  %v937_v5 = vld [vmem:[%s1209_s1 + $0x28] sm:$0xff]   ;;  %s780_s28 = sshll.u32 %s1212_s13, 3  ;;  %s713_s22 = sshll.u32 %s1212_s13, 2 }
   0xd   : > { %845 = vmatpush3.bf16.msra.mxu0 %v933_v1  ;;  %916 = vmatpush3.bf16.msra.mxu1 %v933_v1  ;;  %v938_v6 = vld [vmem:[%s1209_s1 + $0x60] sm:$0xff]   ;;  %v940_v8 = vld [vmem:[%s1209_s1 + $0x58] sm:$0xff]   ;;  %s1068_s5 = scalar_lea.vmem %s1208_s0, %s780_s28  ;;  %v942_v10 = vld [vmem:[%s1209_s1 + $0x50] sm:$0xff]   ;;  %s1158_s24 = scalar_lea.vmem %s1210_s2, %s713_s22 }
   0xe   : > { %846 = vmatprep.subr.bf16.mxu0 %v934_v2  ;;  %909 = vmatprep.subr.bf16.mxu1 %v934_v2  ;;  %v939_v7 = vld [vmem:[%s1209_s1 + $0x20] sm:$0xff]   ;;  %v941_v9 = vld [vmem:[%s1209_s1 + $0x18] sm:$0xff]   ;;  %v943_v13 = vld [vmem:[%s1209_s1 + $0x10] sm:$0xff]  }
   0xf   : > { %v950_v11 = vld [vmem:[%s1068_s5 + $0x4] ss:$8 sps:$4 sm:$0xff]   ;;  %v948_v18 = vld [vmem:[%s1068_s5] ss:$8 sps:$4 sm:$0xff]   ;;  %v954_v20 = vld [vmem:[%s1068_s5 + $0x14] ss:$8 sps:$4 sm:$0xff]  }
  0x10   : > { %v953_v12 = vld [vmem:[%s1068_s5 + $0x44] ss:$8 sps:$4 sm:$0xff]   ;;  %407 = vmatprep.mubr.bf16.mxu0 %v950_v11  ;;  %v951_v19 = vld [vmem:[%s1068_s5 + $0x40] ss:$8 sps:$4 sm:$0xff]   ;;  %v956_v21 = vld [vmem:[%s1068_s5 + $0x54] ss:$8 sps:$4 sm:$0xff]  }
  0x11   : > { %847 = vmatpush3.bf16.msra.mxu0 %v935_v3  ;;  %917 = vmatpush3.bf16.msra.mxu1 %v935_v3  ;;  %v944_v14 = vld [vmem:[%s1209_s1 + $0x48] sm:$0xff]   ;;  %v946_v16 = vld [vmem:[%s1209_s1 + $0x40] sm:$0xff]   ;;  %v958_v22 = vld [vmem:[%s1068_s5 + $0x10] ss:$8 sps:$4 sm:$0xff]  }
  0x12   : > { %848 = vmatprep.subr.bf16.mxu0 %v936_v4  ;;  %910 = vmatprep.subr.bf16.mxu1 %v936_v4  ;;  %v945_v15 = vld [vmem:[%s1209_s1 + $0x8] sm:$0xff]   ;;  %v947_v17 = vld [vmem:[%s1209_s1] sm:$0xff]   ;;  %v959_v23 = vld [vmem:[%s1068_s5 + $0x50] ss:$8 sps:$4 sm:$0xff]  }
  0x13   : > { %439 = vmatprep.mubr.bf16.mxu1 %v953_v12  ;;  %v960_v24 = vld [vmem:[%s1068_s5 + $0x24] ss:$8 sps:$4 sm:$0xff]   ;;  %v964_v26 = vld [vmem:[%s1068_s5 + $0x20] ss:$8 sps:$4 sm:$0xff]   ;;  %v966_v28 = vld [vmem:[%s1068_s5 + $0x34] ss:$8 sps:$4 sm:$0xff]  }
  0x14   : > { %v962_v25 = vld [vmem:[%s1068_s5 + $0x64] ss:$8 sps:$4 sm:$0xff]   ;;  %v965_v27 = vld [vmem:[%s1068_s5 + $0x60] ss:$8 sps:$4 sm:$0xff]   ;;  %v968_v29 = vld [vmem:[%s1068_s5 + $0x74] ss:$8 sps:$4 sm:$0xff]  }
  0x15   : > { %849 = vmatpush3.bf16.msra.mxu0 %v937_v5  ;;  %918 = vmatpush3.bf16.msra.mxu1 %v937_v5  ;;  %v970_v30 = vld [vmem:[%s1068_s5 + $0x30] ss:$8 sps:$4 sm:$0xff]  }
  0x16   : > { %850 = vmatprep.subr.bf16.mxu0 %v938_v6  ;;  %911 = vmatprep.subr.bf16.mxu1 %v938_v6  ;;  %v971_v31 = vld [vmem:[%s1068_s5 + $0x70] ss:$8 sps:$4 sm:$0xff]  }
  0x19   : > { %851 = vmatpush3.bf16.msra.mxu0 %v939_v7  ;;  %919 = vmatpush3.bf16.msra.mxu1 %v939_v7 }
  0x1a   : > { %852 = vmatprep.subr.bf16.mxu0 %v940_v8  ;;  %912 = vmatprep.subr.bf16.mxu1 %v940_v8 }
  0x1d   : > { %853 = vmatpush3.bf16.msra.mxu0 %v941_v9  ;;  %920 = vmatpush3.bf16.msra.mxu1 %v941_v9 }
  0x1e   : > { %854 = vmatprep.subr.bf16.mxu0 %v942_v10  ;;  %913 = vmatprep.subr.bf16.mxu1 %v942_v10 }
  0x21   : > { %855 = vmatpush3.bf16.msra.mxu0 %v943_v13  ;;  %921 = vmatpush3.bf16.msra.mxu1 %v943_v13 }
  0x22   : > { %856 = vmatprep.subr.bf16.mxu0 %v944_v14  ;;  %914 = vmatprep.subr.bf16.mxu1 %v944_v14 }
  0x25   : > { %857 = vmatpush3.bf16.msra.mxu0 %v945_v15  ;;  %922 = vmatpush3.bf16.msra.mxu1 %v945_v15 }
  0x26   : > { %858 = vmatprep.subr.bf16.mxu0 %v946_v16  ;;  %915 = vmatprep.subr.bf16.mxu1 %v946_v16 }
  0x29   : > { %859 = vmatpush3.bf16.msra.mxu0 %v947_v17  ;;  %923 = vmatpush3.bf16.msra.mxu1 %v947_v17 }
  0x2c   : > { %408 = vmatmul.mubr.bf16.vlgmr.msra.gmra.mxu0 %v948_v18  ;;  %440 = vmatmul.mubr.bf16.vlgmr.msra.gmra.mxu1 %v951_v19 }
  0x2d   : > { %415 = vmatprep.mubr.bf16.mxu0 %v954_v20  ;;  %447 = vmatprep.mubr.bf16.mxu1 %v956_v21 }
  0x34   : > { %416 = vmatmul.mubr.bf16.gmra.mxu0 %v958_v22  ;;  %448 = vmatmul.mubr.bf16.gmra.mxu1 %v959_v23 }
  0x35   : > { %423 = vmatprep.mubr.bf16.mxu0 %v960_v24  ;;  %455 = vmatprep.mubr.bf16.mxu1 %v962_v25 }
  0x3c   : > { %424 = vmatmul.mubr.bf16.gmra.mxu0 %v964_v26  ;;  %456 = vmatmul.mubr.bf16.gmra.mxu1 %v965_v27 }
  0x3d   : > { %431 = vmatprep.mubr.bf16.mxu0 %v966_v28  ;;  %463 = vmatprep.mubr.bf16.mxu1 %v968_v29 }
  0x44   : > { %432 = vmatmul.mubr.bf16.gmra.mxu0 %v970_v30  ;;  %464 = vmatmul.mubr.bf16.gmra.mxu1 %v971_v31 }
  0xec   : > { %v860_v32 = vpop.f32.mrf.mxu0  ;;  %v884_v33 = vpop.f32.mrf.mxu1 }
  0xee   : > { %v861_v34 = vpop.f32.mrf.mxu0  ;;  %v885_v35 = vpop.f32.mrf.mxu1 }
  0xef   : > { %v1107_v36 = vadd.f32 %v861_v34, %v860_v32  ;;  %v1109_v37 = vadd.f32 %v885_v35, %v884_v33 }
  0xf0   : > { %v863_v38 = vpop.f32.mrf.mxu0  ;;  %v887_v39 = vpop.f32.mrf.mxu1 }
  0xf1   : > { %v488_v40 = vmin.f32 %v1107_v36, 0.0  ;;  %v496_v41 = vmin.f32 %v1109_v37, 0.0  ;;  %vm472_vm0 = vcmp.gt.f32.partialorder %v1107_v36, 0.0  ;;  %vm480_vm1 = vcmp.gt.f32.partialorder %v1109_v37, 0.0 }
  0xf2   : > { %v864_v42 = vpop.f32.mrf.mxu0  ;;  %v888_v43 = vpop.f32.mrf.mxu1 }
  0xf3   : > { %v504_v44 = vmul.f32 1.442695, %v488_v40  ;;  %v520_v45 = vmul.f32 1.442695, %v496_v41  ;;  %v1113_v46 = vadd.f32 %v864_v42, %v863_v38  ;;  %v1115_v47 = vadd.f32 %v888_v43, %v887_v39 }
  0xf4   : > { %v866_v48 = vpop.f32.mrf.mxu0  ;;  %v890_v49 = vpop.f32.mrf.mxu1 }
  0xf5   : > { %972 = vpow2.f32 %v504_v44  ;;  %v489_v50 = vmin.f32 %v1113_v46, 0.0  ;;  %v497_v51 = vmin.f32 %v1115_v47, 0.0  ;;  %vm473_vm2 = vcmp.gt.f32.partialorder %v1113_v46, 0.0 }
  0xf6   : > { %974 = vpow2.f32 %v520_v45  ;;  %v867_v52 = vpop.f32.mrf.mxu0  ;;  %v891_v53 = vpop.f32.mrf.mxu1  ;;  %vm481_vm3 = vcmp.gt.f32.partialorder %v1115_v47, 0.0 }
  0xf7   : > { %v506_v54 = vmul.f32 1.442695, %v489_v50  ;;  %v1119_v55 = vadd.f32 %v867_v52, %v866_v48  ;;  %v1121_v56 = vadd.f32 %v891_v53, %v890_v49  ;;  %v522_v57 = vmul.f32 1.442695, %v497_v51 }
  0xf8   : > { %v869_v58 = vpop.f32.mrf.mxu0  ;;  %v893_v59 = vpop.f32.mrf.mxu1 }
  0xf9   : > { %976 = vpow2.f32 %v506_v54  ;;  %v490_v60 = vmin.f32 %v1119_v55, 0.0  ;;  %v498_v61 = vmin.f32 %v1121_v56, 0.0  ;;  %vm474_vm4 = vcmp.gt.f32.partialorder %v1119_v55, 0.0 }
  0xfa   : > { %978 = vpow2.f32 %v522_v57  ;;  %v870_v62 = vpop.f32.mrf.mxu0  ;;  %v894_v63 = vpop.f32.mrf.mxu1  ;;  %vm482_vm5 = vcmp.gt.f32.partialorder %v1121_v56, 0.0 }
  0xfb   : > { %v508_v0 = vmul.f32 1.442695, %v490_v60  ;;  %v1125_v1 = vadd.f32 %v870_v62, %v869_v58  ;;  %v1127_v2 = vadd.f32 %v894_v63, %v893_v59  ;;  %v524_v3 = vmul.f32 1.442695, %v498_v61 }
  0xfc   : > { %v872_v4 = vpop.f32.mrf.mxu0  ;;  %v896_v5 = vpop.f32.mrf.mxu1 }
  0xfd   : > { %980 = vpow2.f32 %v508_v0  ;;  %v491_v6 = vmin.f32 %v1125_v1, 0.0  ;;  %v499_v7 = vmin.f32 %v1127_v2, 0.0  ;;  %vm475_vm6 = vcmp.gt.f32.partialorder %v1125_v1, 0.0 }
  0xfe   : > { %982 = vpow2.f32 %v524_v3  ;;  %v873_v8 = vpop.f32.mrf.mxu0  ;;  %v897_v9 = vpop.f32.mrf.mxu1  ;;  %vm483_vm7 = vcmp.gt.f32.partialorder %v1127_v2, 0.0 }
  0xff   : > { %v510_v10 = vmul.f32 1.442695, %v491_v6  ;;  %v1131_v11 = vadd.f32 %v873_v8, %v872_v4  ;;  %v1133_v12 = vadd.f32 %v897_v9, %v896_v5  ;;  %v526_v13 = vmul.f32 1.442695, %v499_v7 }
 0x100   : > { %v875_v14 = vpop.f32.mrf.mxu0  ;;  %v899_v15 = vpop.f32.mrf.mxu1 }
 0x101   : > { %984 = vpow2.f32 %v510_v10  ;;  %v492_v16 = vmin.f32 %v1131_v11, 0.0  ;;  %v500_v18 = vmin.f32 %v1133_v12, 0.0  ;;  %vm476_vm8 = vcmp.gt.f32.partialorder %v1131_v11, 0.0 }
 0x102   : > { %v973_v17 = vpop.eup %972  ;;  %986 = vpow2.f32 %v526_v13  ;;  %v876_v19 = vpop.f32.mrf.mxu0  ;;  %vm484_vm10 = vcmp.gt.f32.partialorder %v1133_v12, 0.0 }
 0x103   : > { %v900_v20 = vpop.f32.mrf.mxu1  ;;  %v975_v21 = vpop.eup %974  ;;  %v512_v22 = vmul.f32 1.442695, %v492_v16  ;;  %v1137_v23 = vadd.f32 %v876_v19, %v875_v14  ;;  %v528_v25 = vmul.f32 1.442695, %v500_v18  ;;  %v746_v28 = vadd.f32 -1.0, %v973_v17 }
 0x104   : > { %v1139_v24 = vadd.f32 %v900_v20, %v899_v15  ;;  %v878_v26 = vpop.f32.mrf.mxu0  ;;  %v754_v31 = vadd.f32 -1.0, %v975_v21 }
 0x105   : > { %v902_v27 = vpop.f32.mrf.mxu1  ;;  %988 = vpow2.f32 %v512_v22  ;;  %v493_v29 = vmin.f32 %v1137_v23, 0.0  ;;  %v552_v48 = vsel %vm472_vm0, %v1107_v36, %v746_v28  ;;  %vm477_vm9 = vcmp.gt.f32.partialorder %v1137_v23, 0.0 }
 0x106   : > { %v977_v30 = vpop.eup %976  ;;  %990 = vpow2.f32 %v528_v25  ;;  %v501_v32 = vmin.f32 %v1139_v24, 0.0  ;;  %v879_v33 = vpop.f32.mrf.mxu0  ;;  %v560_v52 = vsel %vm480_vm1, %v1109_v37, %v754_v31  ;;  %vm485_vm11 = vcmp.gt.f32.partialorder %v1139_v24, 0.0 }
 0x107   : > { %v903_v34 = vpop.f32.mrf.mxu1  ;;  %v979_v35 = vpop.eup %978  ;;  %v747_v38 = vadd.f32 -1.0, %v977_v30  ;;  %v514_v39 = vmul.f32 1.442695, %v493_v29  ;;  %v1146_v40 = vadd.f32 %v879_v33, %v878_v26 }
 0x108   : > { %v1148_v41 = vadd.f32 %v903_v34, %v902_v27  ;;  %v755_v42 = vadd.f32 -1.0, %v979_v35  ;;  %v530_v43 = vmul.f32 1.442695, %v501_v32  ;;  %v881_v44 = vpop.f32.mrf.mxu0 }
 0x109   : > { %v905_v45 = vpop.f32.mrf.mxu1  ;;  %v553_v49 = vsel %vm473_vm2, %v1113_v46, %v747_v38  ;;  %992 = vpow2.f32 %v514_v39  ;;  %v494_v50 = vmin.f32 %v1146_v40, 0.0  ;;  %vm478_vm12 = vcmp.gt.f32.partialorder %v1146_v40, 0.0 }
 0x10a   : > { %v981_v51 = vpop.eup %980  ;;  %v800_v53 = vpack.c.bf16 %v553_v49, %v552_v48  ;;  %v561_v36 = vsel %vm481_vm3, %v1115_v47, %v755_v42  ;;  %994 = vpow2.f32 %v530_v43  ;;  %v882_v54 = vpop.f32.mrf.mxu0  ;;  %v502_v46 = vmin.f32 %v1148_v41, 0.0 }
 0x10b   : > { %v906_v57 = vpop.f32.mrf.mxu1  ;;  %v983_v58 = vpop.eup %982  ;;  %v820_v59 = vpack.c.bf16 %v561_v36, %v560_v52  ;;  %v516_v60 = vmul.f32 1.442695, %v494_v50  ;;  %v1168_v61 = vadd.f32 %v882_v54, %v881_v44  ;;  %v748_v63 = vadd.f32 -1.0, %v981_v51 }
 0x10c   : > { %801 = vst [vmem:[%s1158_s24] sm:$0xff] %v800_v53   ;;  %v1170_v62 = vadd.f32 %v906_v57, %v905_v45  ;;  %v532_v0 = vmul.f32 1.442695, %v502_v46  ;;  %v756_v3 = vadd.f32 -1.0, %v983_v58  ;;  %vm486_vm14 = vcmp.gt.f32.partialorder %v1148_v41, 0.0 }
 0x10d   : > { %840 = vst [vmem:[%s1158_s24 + $0x20] sm:$0xff] %v820_v59   ;;  %996 = vpow2.f32 %v516_v60  ;;  %v495_v47 = vmin.f32 %v1168_v61, 0.0  ;;  %v554_v9 = vsel %vm474_vm4, %v1119_v55, %v748_v63  ;;  %vm479_vm13 = vcmp.gt.f32.partialorder %v1168_v61, 0.0 }
 0x10e   : > { %v985_v37 = vpop.eup %984  ;;  %998 = vpow2.f32 %v532_v0  ;;  %v503_v6 = vmin.f32 %v1170_v62, 0.0  ;;  %v562_v15 = vsel %vm482_vm5, %v1121_v56, %v756_v3  ;;  %vm487_vm15 = vcmp.gt.f32.partialorder %v1170_v62, 0.0 }
 0x10f   : > { %v987_v4 = vpop.eup %986  ;;  %v749_v5 = vadd.f32 -1.0, %v985_v37  ;;  %v518_v8 = vmul.f32 1.442695, %v495_v47 }
 0x110   : > { %v757_v7 = vadd.f32 -1.0, %v987_v4  ;;  %v534_v13 = vmul.f32 1.442695, %v503_v6 }
 0x111   : > { %v555_v10 = vsel %vm475_vm6, %v1125_v1, %v749_v5  ;;  %1000 = vpow2.f32 %v518_v8 }
 0x112   : > { %v989_v14 = vpop.eup %988  ;;  %v805_v16 = vpack.c.bf16 %v555_v10, %v554_v9  ;;  %v563_v17 = vsel %vm483_vm7, %v1127_v2, %v757_v7  ;;  %1002 = vpow2.f32 %v534_v13 }
 0x113   : > { %v991_v18 = vpop.eup %990  ;;  %v825_v19 = vpack.c.bf16 %v563_v17, %v562_v15  ;;  %v750_v20 = vadd.f32 -1.0, %v989_v14 }
 0x114   : > { %837 = vst [vmem:[%s1158_s24 + $0x8] sm:$0xff] %v805_v16   ;;  %v758_v55 = vadd.f32 -1.0, %v991_v18 }
 0x115   : > { %841 = vst [vmem:[%s1158_s24 + $0x28] sm:$0xff] %v825_v19   ;;  %v556_v2 = vsel %vm476_vm8, %v1131_v11, %v750_v20 }
 0x116   : > { %v993_v21 = vpop.eup %992  ;;  %v564_v26 = vsel %vm484_vm10, %v1133_v12, %v758_v55 }
 0x117   : > { %v995_v1 = vpop.eup %994  ;;  %v751_v22 = vadd.f32 -1.0, %v993_v21 }
 0x118   : > { %v759_v56 = vadd.f32 -1.0, %v995_v1 }
 0x119   : > { %v557_v25 = vsel %vm477_vm9, %v1137_v23, %v751_v22 }
 0x11a   : > { %v810_v27 = vpack.c.bf16 %v557_v25, %v556_v2  ;;  %v565_v28 = vsel %vm485_vm11, %v1139_v24, %v759_v56  ;;  %v997_v29 = vpop.eup %996 }
 0x11b   : > { %v830_v30 = vpack.c.bf16 %v565_v28, %v564_v26  ;;  %v999_v31 = vpop.eup %998  ;;  %v752_v32 = vadd.f32 -1.0, %v997_v29 }
 0x11c   : > { %838 = vst [vmem:[%s1158_s24 + $0x10] sm:$0xff] %v810_v27   ;;  %v760_v11 = vadd.f32 -1.0, %v999_v31 }
 0x11d   : > { %842 = vst [vmem:[%s1158_s24 + $0x30] sm:$0xff] %v830_v30   ;;  %v558_v23 = vsel %vm478_vm12, %v1146_v40, %v752_v32 }
 0x11e   : > { %v1001_v33 = vpop.eup %1000  ;;  %v566_v38 = vsel %vm486_vm14, %v1148_v41, %v760_v11 }
 0x11f   : > { %v1003_v34 = vpop.eup %1002  ;;  %v753_v35 = vadd.f32 -1.0, %v1001_v33 }
 0x120   : > { %v761_v12 = vadd.f32 -1.0, %v1003_v34 }
 0x121   : > { %v559_v24 = vsel %vm479_vm13, %v1168_v61, %v753_v35 }
 0x122   : > { %v815_v39 = vpack.c.bf16 %v559_v24, %v558_v23  ;;  %v567_v42 = vsel %vm487_vm15, %v1170_v62, %v761_v12 }
 0x123   : > { %v835_v43 = vpack.c.bf16 %v567_v42, %v566_v38 }
 0x124   : > { %839 = vst [vmem:[%s1158_s24 + $0x18] sm:$0xff] %v815_v39  }
 0x125   : > { %843 = vst [vmem:[%s1158_s24 + $0x38] sm:$0xff] %v835_v43  }
 0x126 PF: > { %s12_s9 = sadd.s32 1, %s1010_s9  }
 0x127   : > { %p9_p4 = scmp.ge.s32.totalorder %s12_s9, 4  }
 0x129   :  { %11 = sbr.rel (!%p9_p4) target bundleno = 1 (0x1), region = 58 }

// kernel: gcn_forward.4
= control target key start
LH: loop header
LB: loop body
LE: loop exit
PB: predicated region body
PF: predicated region fallthrough
CT: control target
= control target key end

     0   :  { %s766_s12 = smov 0   ;;  %s837_s0 = inlined_call_operand.vmem [shape: bf16[256,128], index: 0, kind: input, shape index: {}]   ;;  %s838_s1 = inlined_call_operand.vmem [shape: bf16[128,128], index: 1, kind: input, shape index: {}]   ;;  %s839_s2 = inlined_call_operand.vmem [shape: f32[1,128], index: 2, kind: input, shape index: {}]   ;;  %s840_s3 = inlined_call_operand.vmem [shape: bf16[256,128], index: 3, kind: output, shape index: {}]  }
   0x1 LB: > { %s543_s13 = sadd.s32 4294967295, %s744_s12   ;;  %p547_p0 = scmp.ge.s32.totalorder %s744_s12, 1  ;;  %s744_s12 = sphi %s766_s12, %s13_s12  }
   0x2   : > { %p138_p1 = scmp.lt.s32.totalorder %s744_s12, 3 }
   0x4   : > { %p139_p2 = pnand %p547_p0, %p138_p1 }
   0x5   : > { %s548_s16 = sshll.u32 (!%p139_p2), %s543_s13, 4 }
   0x6   : > { %142 = sbr.rel (%p139_p2) target bundleno = 256 (0x100), region = 32  ;;  %p163_p3 = scmp.lt.s32.totalorder (!%p139_p2), %s548_s16, 31 }
   0xb   : > { %v722_v0 = vld [vmem:[%s838_s1 + $0x38] sm:$0xff]   ;;  %v723_v1 = vld [vmem:[%s838_s1 + $0x30] sm:$0xff]   ;;  %s842_s16 = smov (!%p163_p3, %s548_s16), 31  ;;  %v724_v2 = vld [vmem:[%s838_s1 + $0x28] sm:$0xff]  }
   0xc   : > { %666 = vmatprep.subr.bf16.mxu0 %v722_v0  ;;  %698 = vmatprep.subr.bf16.mxu1 %v722_v0  ;;  %s549_s21 = sshll.u32 %s842_s16, 2  ;;  %v725_v3 = vld [vmem:[%s838_s1 + $0x20] sm:$0xff]   ;;  %v726_v6 = vld [vmem:[%s838_s1 + $0x18] sm:$0xff]   ;;  %v727_v7 = vld [vmem:[%s838_s1 + $0x10] sm:$0xff]  }
   0xd   : > { %667 = vmatpush3.bf16.msra.mxu0 %v722_v0  ;;  %706 = vmatpush3.bf16.msra.mxu1 %v722_v0  ;;  %s791_s24 = scalar_lea.vmem %s837_s0, %s549_s21  ;;  %v728_v8 = vld [vmem:[%s838_s1 + $0x8] sm:$0xff]   ;;  %v729_v9 = vld [vmem:[%s838_s1] sm:$0xff]   ;;  %s824_s13 = scalar_lea.vmem %s840_s3, %s549_s21 }
   0xe   : > { %668 = vmatprep.subr.bf16.mxu0 %v723_v1  ;;  %699 = vmatprep.subr.bf16.mxu1 %v723_v1  ;;  %v730_v4 = vld [vmem:[%s791_s24] sm:$0xff]   ;;  %v732_v10 = vld [vmem:[%s791_s24 + $0x8] sm:$0xff]   ;;  %v734_v12 = vld [vmem:[%s791_s24 + $0x10] sm:$0xff]  }
   0xf   : > { %v731_v5 = vld [vmem:[%s791_s24 + $0x20] sm:$0xff]   ;;  %682 = vmatprep.mubr.bf16.mxu0 %v730_v4  ;;  %v733_v11 = vld [vmem:[%s791_s24 + $0x28] sm:$0xff]   ;;  %v735_v13 = vld [vmem:[%s791_s24 + $0x30] sm:$0xff]  }
  0x10   : > { %690 = vmatprep.mubr.bf16.mxu1 %v731_v5  ;;  %v736_v14 = vld [vmem:[%s791_s24 + $0x18] sm:$0xff]   ;;  %v552_v18 = vld [vmem:[%s839_s2] ss:$0 sm:$0xff] }
  0x11   : > { %669 = vmatpush3.bf16.msra.mxu0 %v723_v1  ;;  %707 = vmatpush3.bf16.msra.mxu1 %v723_v1  ;;  %v737_v15 = vld [vmem:[%s791_s24 + $0x38] sm:$0xff]  }
  0x12   : > { %670 = vmatprep.subr.bf16.mxu0 %v724_v2  ;;  %700 = vmatprep.subr.bf16.mxu1 %v724_v2 }
  0x15   : > { %671 = vmatpush3.bf16.msra.mxu0 %v724_v2  ;;  %708 = vmatpush3.bf16.msra.mxu1 %v724_v2 }
  0x16   : > { %672 = vmatprep.subr.bf16.mxu0 %v725_v3  ;;  %701 = vmatprep.subr.bf16.mxu1 %v725_v3 }
  0x19   : > { %673 = vmatpush3.bf16.msra.mxu0 %v725_v3  ;;  %709 = vmatpush3.bf16.msra.mxu1 %v725_v3 }
  0x1a   : > { %674 = vmatprep.subr.bf16.mxu0 %v726_v6  ;;  %702 = vmatprep.subr.bf16.mxu1 %v726_v6 }
  0x1d   : > { %675 = vmatpush3.bf16.msra.mxu0 %v726_v6  ;;  %710 = vmatpush3.bf16.msra.mxu1 %v726_v6 }
  0x1e   : > { %676 = vmatprep.subr.bf16.mxu0 %v727_v7  ;;  %703 = vmatprep.subr.bf16.mxu1 %v727_v7 }
  0x21   : > { %677 = vmatpush3.bf16.msra.mxu0 %v727_v7  ;;  %711 = vmatpush3.bf16.msra.mxu1 %v727_v7 }
  0x22   : > { %678 = vmatprep.subr.bf16.mxu0 %v728_v8  ;;  %704 = vmatprep.subr.bf16.mxu1 %v728_v8 }
  0x25   : > { %679 = vmatpush3.bf16.msra.mxu0 %v728_v8  ;;  %712 = vmatpush3.bf16.msra.mxu1 %v728_v8 }
  0x26   : > { %680 = vmatprep.subr.bf16.mxu0 %v729_v9  ;;  %705 = vmatprep.subr.bf16.mxu1 %v729_v9 }
  0x29   : > { %681 = vmatpush3.bf16.msra.mxu0 %v729_v9  ;;  %713 = vmatpush3.bf16.msra.mxu1 %v729_v9 }
  0x2c   : > { %683 = vmatmul.mubr.bf16.vlgmr.msra.gmra.mxu0 %v732_v10  ;;  %691 = vmatmul.mubr.bf16.vlgmr.msra.gmra.mxu1 %v733_v11 }
  0x2d   : > { %686 = vmatprep.mubr.bf16.mxu0 %v734_v12  ;;  %694 = vmatprep.mubr.bf16.mxu1 %v735_v13 }
  0x34   : > { %687 = vmatmul.mubr.bf16.gmra.mxu0 %v736_v14  ;;  %695 = vmatmul.mubr.bf16.gmra.mxu1 %v737_v15 }
  0xec   : > { %v684_v16 = vpop.f32.mrf.mxu0  ;;  %v692_v17 = vpop.f32.mrf.mxu1 }
  0xed   : > { %v353_v23 = vadd.f32 %v684_v16, %v552_v18  ;;  %v385_v24 = vadd.f32 %v692_v17, %v552_v18 }
  0xee   : > { %v344_v19 = vpop.f32.mrf.mxu0  ;;  %v376_v20 = vpop.f32.mrf.mxu1 }
  0xef   : > { %v345_v27 = vadd.f32 %v552_v18, %v344_v19  ;;  %v377_v28 = vadd.f32 %v552_v18, %v376_v20 }
  0xf0   : > { %v685_v21 = vpop.f32.mrf.mxu0  ;;  %v693_v22 = vpop.f32.mrf.mxu1 }
  0xf1   : > { %v356_v25 = vadd.f32 %v685_v21, %v552_v18  ;;  %v388_v26 = vadd.f32 %v693_v22, %v552_v18 }
  0xf2   : > { %v347_v29 = vpop.f32.mrf.mxu0  ;;  %v379_v30 = vpop.f32.mrf.mxu1 }
  0xf3   : > { %v611_v31 = vpack.c.bf16 %v356_v25, %v353_v23  ;;  %v631_v32 = vpack.c.bf16 %v388_v26, %v385_v24  ;;  %v348_v33 = vadd.f32 %v552_v18, %v347_v29  ;;  %v380_v34 = vadd.f32 %v552_v18, %v379_v30 }
  0xf4   : > { %v688_v35 = vpop.f32.mrf.mxu0  ;;  %v696_v36 = vpop.f32.mrf.mxu1 }
  0xf5   : > { %643 = vst [vmem:[%s824_s13 + $0x8] sm:$0xff] %v611_v31   ;;  %647 = vst [vmem:[%s824_s13 + $0x28] sm:$0xff] %v631_v32   ;;  %v606_v37 = vpack.c.bf16 %v348_v33, %v345_v27  ;;  %v626_v38 = vpack.c.bf16 %v380_v34, %v377_v28  ;;  %v369_v43 = vadd.f32 %v688_v35, %v552_v18 }
  0xf6   : > { %v360_v39 = vpop.f32.mrf.mxu0  ;;  %v392_v40 = vpop.f32.mrf.mxu1  ;;  %v401_v44 = vadd.f32 %v696_v36, %v552_v18 }
  0xf7   : > { %607 = vst [vmem:[%s824_s13] sm:$0xff] %v606_v37   ;;  %646 = vst [vmem:[%s824_s13 + $0x20] sm:$0xff] %v626_v38   ;;  %v361_v47 = vadd.f32 %v552_v18, %v360_v39  ;;  %v393_v48 = vadd.f32 %v552_v18, %v392_v40 }
  0xf8   : > { %v689_v41 = vpop.f32.mrf.mxu0  ;;  %v697_v42 = vpop.f32.mrf.mxu1 }
  0xf9   : > { %v372_v45 = vadd.f32 %v689_v41, %v552_v18  ;;  %v404_v46 = vadd.f32 %v697_v42, %v552_v18 }
  0xfa   : > { %v363_v49 = vpop.f32.mrf.mxu0  ;;  %v395_v50 = vpop.f32.mrf.mxu1 }
  0xfb   : > { %v621_v51 = vpack.c.bf16 %v372_v45, %v369_v43  ;;  %v641_v52 = vpack.c.bf16 %v404_v46, %v401_v44  ;;  %v364_v53 = vadd.f32 %v552_v18, %v363_v49  ;;  %v396_v54 = vadd.f32 %v552_v18, %v395_v50 }
  0xfd   : > { %645 = vst [vmem:[%s824_s13 + $0x18] sm:$0xff] %v621_v51   ;;  %649 = vst [vmem:[%s824_s13 + $0x38] sm:$0xff] %v641_v52   ;;  %v616_v55 = vpack.c.bf16 %v364_v53, %v361_v47  ;;  %v636_v56 = vpack.c.bf16 %v396_v54, %v393_v48 }
  0xff   : > { %644 = vst [vmem:[%s824_s13 + $0x10] sm:$0xff] %v616_v55   ;;  %648 = vst [vmem:[%s824_s13 + $0x30] sm:$0xff] %v636_v56  }
 0x100 PF: > { %s13_s12 = sadd.s32 1, %s744_s12  }
 0x101   : > { %p10_p4 = scmp.ge.s32.totalorder %s13_s12, 4  }
 0x103   :  { %12 = sbr.rel (!%p10_p4) target bundleno = 1 (0x1), region = 62 }

// kernel: gcn_forward.7
= control target key start
LH: loop header
LB: loop body
LE: loop exit
PB: predicated region body
PF: predicated region fallthrough
CT: control target
= control target key end

     0   :  { %s884_s9 = smov 0   ;;  %s1072_s0 = inlined_call_operand.vmem [shape: bf16[256,256], index: 0, kind: input, shape index: {}]   ;;  %s1073_s1 = inlined_call_operand.vmem [shape: bf16[256,128], index: 1, kind: input, shape index: {}]   ;;  %s1074_s2 = inlined_call_operand.vmem [shape: f32[256,128], index: 2, kind: output, shape index: {}]  }
   0x1 LB: > { %s640_s10 = sadd.s32 4294967295, %s867_s9   ;;  %p644_p0 = scmp.ge.s32.totalorder %s867_s9, 1  ;;  %s867_s9 = sphi %s884_s9, %s12_s9  }
   0x2   : > { %p114_p1 = scmp.lt.s32.totalorder %s867_s9, 3 }
   0x4   : > { %p115_p2 = pnand %p644_p0, %p114_p1 }
   0x5   : > { %s645_s13 = sshll.u32 (!%p115_p2), %s640_s10, 4 }
   0x6   : > { %118 = sbr.rel (%p115_p2) target bundleno = 292 (0x124), region = 28  ;;  %p138_p3 = scmp.lt.s32.totalorder (!%p115_p2), %s645_s13, 31 }
   0xb   : > { %v789_v0 = vld [vmem:[%s1073_s1 + $0x78] sm:$0xff]   ;;  %v791_v2 = vld [vmem:[%s1073_s1 + $0x70] sm:$0xff]   ;;  %v793_v4 = vld [vmem:[%s1073_s1 + $0x68] sm:$0xff]   ;;  %s1076_s13 = smov (!%p138_p3, %s645_s13), 31 }
   0xc   : > { %v790_v1 = vld [vmem:[%s1073_s1 + $0x38] sm:$0xff]   ;;  %701 = vmatprep.subr.bf16.mxu0 %v789_v0  ;;  %765 = vmatprep.subr.bf16.mxu1 %v789_v0  ;;  %v792_v3 = vld [vmem:[%s1073_s1 + $0x30] sm:$0xff]   ;;  %v794_v5 = vld [vmem:[%s1073_s1 + $0x28] sm:$0xff]   ;;  %s700_s28 = sshll.u32 %s1076_s13, 3 }
   0xd   : > { %702 = vmatpush3.bf16.msra.mxu0 %v790_v1  ;;  %773 = vmatpush3.bf16.msra.mxu1 %v790_v1  ;;  %v795_v6 = vld [vmem:[%s1073_s1 + $0x60] sm:$0xff]   ;;  %v797_v8 = vld [vmem:[%s1073_s1 + $0x58] sm:$0xff]   ;;  %s927_s5 = scalar_lea.vmem %s1072_s0, %s700_s28  ;;  %v799_v10 = vld [vmem:[%s1073_s1 + $0x50] sm:$0xff]   ;;  %s1001_s24 = scalar_lea.vmem %s1074_s2, %s700_s28 }
   0xe   : > { %703 = vmatprep.subr.bf16.mxu0 %v791_v2  ;;  %766 = vmatprep.subr.bf16.mxu1 %v791_v2  ;;  %v796_v7 = vld [vmem:[%s1073_s1 + $0x20] sm:$0xff]   ;;  %v798_v9 = vld [vmem:[%s1073_s1 + $0x18] sm:$0xff]   ;;  %v800_v13 = vld [vmem:[%s1073_s1 + $0x10] sm:$0xff]  }
   0xf   : > { %v807_v11 = vld [vmem:[%s927_s5 + $0x4] ss:$8 sps:$4 sm:$0xff]   ;;  %v805_v18 = vld [vmem:[%s927_s5] ss:$8 sps:$4 sm:$0xff]   ;;  %v811_v20 = vld [vmem:[%s927_s5 + $0x14] ss:$8 sps:$4 sm:$0xff]  }
  0x10   : > { %v810_v12 = vld [vmem:[%s927_s5 + $0x44] ss:$8 sps:$4 sm:$0xff]   ;;  %407 = vmatprep.mubr.bf16.mxu0 %v807_v11  ;;  %v808_v19 = vld [vmem:[%s927_s5 + $0x40] ss:$8 sps:$4 sm:$0xff]   ;;  %v813_v21 = vld [vmem:[%s927_s5 + $0x54] ss:$8 sps:$4 sm:$0xff]  }
  0x11   : > { %704 = vmatpush3.bf16.msra.mxu0 %v792_v3  ;;  %774 = vmatpush3.bf16.msra.mxu1 %v792_v3  ;;  %v801_v14 = vld [vmem:[%s1073_s1 + $0x48] sm:$0xff]   ;;  %v803_v16 = vld [vmem:[%s1073_s1 + $0x40] sm:$0xff]   ;;  %v815_v22 = vld [vmem:[%s927_s5 + $0x10] ss:$8 sps:$4 sm:$0xff]  }
  0x12   : > { %705 = vmatprep.subr.bf16.mxu0 %v793_v4  ;;  %767 = vmatprep.subr.bf16.mxu1 %v793_v4  ;;  %v802_v15 = vld [vmem:[%s1073_s1 + $0x8] sm:$0xff]   ;;  %v804_v17 = vld [vmem:[%s1073_s1] sm:$0xff]   ;;  %v816_v23 = vld [vmem:[%s927_s5 + $0x50] ss:$8 sps:$4 sm:$0xff]  }
  0x13   : > { %439 = vmatprep.mubr.bf16.mxu1 %v810_v12  ;;  %v817_v24 = vld [vmem:[%s927_s5 + $0x24] ss:$8 sps:$4 sm:$0xff]   ;;  %v821_v26 = vld [vmem:[%s927_s5 + $0x20] ss:$8 sps:$4 sm:$0xff]   ;;  %v823_v28 = vld [vmem:[%s927_s5 + $0x34] ss:$8 sps:$4 sm:$0xff]  }
  0x14   : > { %v819_v25 = vld [vmem:[%s927_s5 + $0x64] ss:$8 sps:$4 sm:$0xff]   ;;  %v822_v27 = vld [vmem:[%s927_s5 + $0x60] ss:$8 sps:$4 sm:$0xff]   ;;  %v825_v29 = vld [vmem:[%s927_s5 + $0x74] ss:$8 sps:$4 sm:$0xff]  }
  0x15   : > { %706 = vmatpush3.bf16.msra.mxu0 %v794_v5  ;;  %775 = vmatpush3.bf16.msra.mxu1 %v794_v5  ;;  %v827_v30 = vld [vmem:[%s927_s5 + $0x30] ss:$8 sps:$4 sm:$0xff]  }
  0x16   : > { %707 = vmatprep.subr.bf16.mxu0 %v795_v6  ;;  %768 = vmatprep.subr.bf16.mxu1 %v795_v6  ;;  %v828_v31 = vld [vmem:[%s927_s5 + $0x70] ss:$8 sps:$4 sm:$0xff]  }
  0x19   : > { %708 = vmatpush3.bf16.msra.mxu0 %v796_v7  ;;  %776 = vmatpush3.bf16.msra.mxu1 %v796_v7 }
  0x1a   : > { %709 = vmatprep.subr.bf16.mxu0 %v797_v8  ;;  %769 = vmatprep.subr.bf16.mxu1 %v797_v8 }
  0x1d   : > { %710 = vmatpush3.bf16.msra.mxu0 %v798_v9  ;;  %777 = vmatpush3.bf16.msra.mxu1 %v798_v9 }
  0x1e   : > { %711 = vmatprep.subr.bf16.mxu0 %v799_v10  ;;  %770 = vmatprep.subr.bf16.mxu1 %v799_v10 }
  0x21   : > { %712 = vmatpush3.bf16.msra.mxu0 %v800_v13  ;;  %778 = vmatpush3.bf16.msra.mxu1 %v800_v13 }
  0x22   : > { %713 = vmatprep.subr.bf16.mxu0 %v801_v14  ;;  %771 = vmatprep.subr.bf16.mxu1 %v801_v14 }
  0x25   : > { %714 = vmatpush3.bf16.msra.mxu0 %v802_v15  ;;  %779 = vmatpush3.bf16.msra.mxu1 %v802_v15 }
  0x26   : > { %715 = vmatprep.subr.bf16.mxu0 %v803_v16  ;;  %772 = vmatprep.subr.bf16.mxu1 %v803_v16 }
  0x29   : > { %716 = vmatpush3.bf16.msra.mxu0 %v804_v17  ;;  %780 = vmatpush3.bf16.msra.mxu1 %v804_v17 }
  0x2c   : > { %408 = vmatmul.mubr.bf16.vlgmr.msra.gmra.mxu0 %v805_v18  ;;  %440 = vmatmul.mubr.bf16.vlgmr.msra.gmra.mxu1 %v808_v19 }
  0x2d   : > { %415 = vmatprep.mubr.bf16.mxu0 %v811_v20  ;;  %447 = vmatprep.mubr.bf16.mxu1 %v813_v21 }
  0x34   : > { %416 = vmatmul.mubr.bf16.gmra.mxu0 %v815_v22  ;;  %448 = vmatmul.mubr.bf16.gmra.mxu1 %v816_v23 }
  0x35   : > { %423 = vmatprep.mubr.bf16.mxu0 %v817_v24  ;;  %455 = vmatprep.mubr.bf16.mxu1 %v819_v25 }
  0x3c   : > { %424 = vmatmul.mubr.bf16.gmra.mxu0 %v821_v26  ;;  %456 = vmatmul.mubr.bf16.gmra.mxu1 %v822_v27 }
  0x3d   : > { %431 = vmatprep.mubr.bf16.mxu0 %v823_v28  ;;  %463 = vmatprep.mubr.bf16.mxu1 %v825_v29 }
  0x44   : > { %432 = vmatmul.mubr.bf16.gmra.mxu0 %v827_v30  ;;  %464 = vmatmul.mubr.bf16.gmra.mxu1 %v828_v31 }
  0xec   : > { %v717_v32 = vpop.f32.mrf.mxu0  ;;  %v741_v33 = vpop.f32.mrf.mxu1 }
  0xee   : > { %v718_v34 = vpop.f32.mrf.mxu0  ;;  %v742_v35 = vpop.f32.mrf.mxu1 }
  0xef   : > { %v966_v36 = vadd.f32 %v718_v34, %v717_v32  ;;  %v968_v37 = vadd.f32 %v742_v35, %v741_v33 }
  0xf0   : > { %v720_v38 = vpop.f32.mrf.mxu0  ;;  %v744_v39 = vpop.f32.mrf.mxu1 }
  0xf1   : > { %v488_v40 = vmin.f32 %v966_v36, 0.0  ;;  %v496_v41 = vmin.f32 %v968_v37, 0.0  ;;  %vm472_vm0 = vcmp.gt.f32.partialorder %v966_v36, 0.0  ;;  %vm480_vm1 = vcmp.gt.f32.partialorder %v968_v37, 0.0 }
  0xf2   : > { %v721_v42 = vpop.f32.mrf.mxu0  ;;  %v745_v43 = vpop.f32.mrf.mxu1 }
  0xf3   : > { %v504_v44 = vmul.f32 1.442695, %v488_v40  ;;  %v520_v45 = vmul.f32 1.442695, %v496_v41  ;;  %v972_v46 = vadd.f32 %v721_v42, %v720_v38  ;;  %v974_v47 = vadd.f32 %v745_v43, %v744_v39 }
  0xf4   : > { %v723_v48 = vpop.f32.mrf.mxu0  ;;  %v747_v49 = vpop.f32.mrf.mxu1 }
  0xf5   : > { %829 = vpow2.f32 %v504_v44  ;;  %v489_v50 = vmin.f32 %v972_v46, 0.0  ;;  %v497_v51 = vmin.f32 %v974_v47, 0.0  ;;  %vm473_vm2 = vcmp.gt.f32.partialorder %v972_v46, 0.0 }
  0xf6   : > { %831 = vpow2.f32 %v520_v45  ;;  %v724_v52 = vpop.f32.mrf.mxu0  ;;  %v748_v53 = vpop.f32.mrf.mxu1  ;;  %vm481_vm3 = vcmp.gt.f32.partialorder %v974_v47, 0.0 }
  0xf7   : > { %v506_v54 = vmul.f32 1.442695, %v489_v50  ;;  %v978_v55 = vadd.f32 %v724_v52, %v723_v48  ;;  %v980_v56 = vadd.f32 %v748_v53, %v747_v49  ;;  %v522_v57 = vmul.f32 1.442695, %v497_v51 }
  0xf8   : > { %v726_v58 = vpop.f32.mrf.mxu0  ;;  %v750_v59 = vpop.f32.mrf.mxu1 }
  0xf9   : > { %833 = vpow2.f32 %v506_v54  ;;  %v490_v60 = vmin.f32 %v978_v55, 0.0  ;;  %v498_v61 = vmin.f32 %v980_v56, 0.0  ;;  %vm474_vm4 = vcmp.gt.f32.partialorder %v978_v55, 0.0 }
  0xfa   : > { %835 = vpow2.f32 %v522_v57  ;;  %v727_v62 = vpop.f32.mrf.mxu0  ;;  %v751_v63 = vpop.f32.mrf.mxu1  ;;  %vm482_vm5 = vcmp.gt.f32.partialorder %v980_v56, 0.0 }
  0xfb   : > { %v508_v0 = vmul.f32 1.442695, %v490_v60  ;;  %v984_v1 = vadd.f32 %v727_v62, %v726_v58  ;;  %v986_v2 = vadd.f32 %v751_v63, %v750_v59  ;;  %v524_v3 = vmul.f32 1.442695, %v498_v61 }
  0xfc   : > { %v729_v4 = vpop.f32.mrf.mxu0  ;;  %v753_v5 = vpop.f32.mrf.mxu1 }
  0xfd   : > { %837 = vpow2.f32 %v508_v0  ;;  %v491_v6 = vmin.f32 %v984_v1, 0.0  ;;  %v499_v7 = vmin.f32 %v986_v2, 0.0  ;;  %vm475_vm6 = vcmp.gt.f32.partialorder %v984_v1, 0.0 }
  0xfe   : > { %839 = vpow2.f32 %v524_v3  ;;  %v730_v8 = vpop.f32.mrf.mxu0  ;;  %v754_v9 = vpop.f32.mrf.mxu1  ;;  %vm483_vm7 = vcmp.gt.f32.partialorder %v986_v2, 0.0 }
  0xff   : > { %v510_v10 = vmul.f32 1.442695, %v491_v6  ;;  %v990_v11 = vadd.f32 %v730_v8, %v729_v4  ;;  %v992_v12 = vadd.f32 %v754_v9, %v753_v5  ;;  %v526_v13 = vmul.f32 1.442695, %v499_v7 }
 0x100   : > { %v732_v14 = vpop.f32.mrf.mxu0  ;;  %v756_v15 = vpop.f32.mrf.mxu1 }
 0x101   : > { %841 = vpow2.f32 %v510_v10  ;;  %v492_v16 = vmin.f32 %v990_v11, 0.0  ;;  %v500_v18 = vmin.f32 %v992_v12, 0.0  ;;  %vm476_vm8 = vcmp.gt.f32.partialorder %v990_v11, 0.0 }
 0x102   : > { %v830_v17 = vpop.eup %829  ;;  %843 = vpow2.f32 %v526_v13  ;;  %v733_v19 = vpop.f32.mrf.mxu0  ;;  %vm484_vm9 = vcmp.gt.f32.partialorder %v992_v12, 0.0 }
 0x103   : > { %v757_v20 = vpop.f32.mrf.mxu1  ;;  %v832_v21 = vpop.eup %831  ;;  %v682_v22 = vadd.f32 -1.0, %v830_v17  ;;  %v512_v23 = vmul.f32 1.442695, %v492_v16  ;;  %v1003_v24 = vadd.f32 %v733_v19, %v732_v14  ;;  %v528_v27 = vmul.f32 1.442695, %v500_v18 }
 0x104   : > { %v1005_v25 = vadd.f32 %v757_v20, %v756_v15  ;;  %v690_v26 = vadd.f32 -1.0, %v832_v21  ;;  %v735_v28 = vpop.f32.mrf.mxu0 }
 0x105   : > { %v759_v29 = vpop.f32.mrf.mxu1  ;;  %v552_v30 = vsel %vm472_vm0, %v966_v36, %v682_v22  ;;  %845 = vpow2.f32 %v512_v23  ;;  %v493_v31 = vmin.f32 %v1003_v24, 0.0  ;;  %vm477_vm10 = vcmp.gt.f32.partialorder %v1003_v24, 0.0 }
 0x106   : > { %v834_v32 = vpop.eup %833  ;;  %568 = vst [vmem:[%s1001_s24] sm:$0xff] %v552_v30  ;;  %v560_v33 = vsel %vm480_vm1, %v968_v37, %v690_v26  ;;  %847 = vpow2.f32 %v528_v27  ;;  %v501_v34 = vmin.f32 %v1005_v25, 0.0  ;;  %v736_v35 = vpop.f32.mrf.mxu0  ;;  %vm485_vm11 = vcmp.gt.f32.partialorder %v1005_v25, 0.0 }
 0x107   : > { %v760_v38 = vpop.f32.mrf.mxu1  ;;  %v836_v39 = vpop.eup %835  ;;  %576 = vst [vmem:[%s1001_s24 + $0x40] sm:$0xff] %v560_v33  ;;  %v683_v40 = vadd.f32 -1.0, %v834_v32  ;;  %v514_v41 = vmul.f32 1.442695, %v493_v31  ;;  %v1015_v36 = vadd.f32 %v736_v35, %v735_v28 }
 0x108   : > { %v1017_v42 = vadd.f32 %v760_v38, %v759_v29  ;;  %v691_v43 = vadd.f32 -1.0, %v836_v39  ;;  %v530_v44 = vmul.f32 1.442695, %v501_v34  ;;  %v738_v37 = vpop.f32.mrf.mxu0 }
 0x109   : > { %v762_v45 = vpop.f32.mrf.mxu1  ;;  %v553_v48 = vsel %vm473_vm2, %v972_v46, %v683_v40  ;;  %849 = vpow2.f32 %v514_v41  ;;  %v494_v49 = vmin.f32 %v1015_v36, 0.0  ;;  %vm478_vm12 = vcmp.gt.f32.partialorder %v1015_v36, 0.0 }
 0x10a   : > { %v838_v50 = vpop.eup %837  ;;  %569 = vst [vmem:[%s1001_s24 + $0x8] sm:$0xff] %v553_v48  ;;  %v561_v51 = vsel %vm481_vm3, %v974_v47, %v691_v43  ;;  %851 = vpow2.f32 %v530_v44  ;;  %v502_v52 = vmin.f32 %v1017_v42, 0.0  ;;  %v739_v53 = vpop.f32.mrf.mxu0  ;;  %vm486_vm13 = vcmp.gt.f32.partialorder %v1017_v42, 0.0 }
 0x10b   : > { %v763_v54 = vpop.f32.mrf.mxu1  ;;  %v840_v57 = vpop.eup %839  ;;  %577 = vst [vmem:[%s1001_s24 + $0x48] sm:$0xff] %v561_v51  ;;  %v684_v58 = vadd.f32 -1.0, %v838_v50  ;;  %v516_v59 = vmul.f32 1.442695, %v494_v49  ;;  %v1027_v46 = vadd.f32 %v739_v53, %v738_v37 }
 0x10c   : > { %v1029_v60 = vadd.f32 %v763_v54, %v762_v45  ;;  %v692_v61 = vadd.f32 -1.0, %v840_v57  ;;  %v532_v62 = vmul.f32 1.442695, %v502_v52 }
 0x10d   : > { %v554_v47 = vsel %vm474_vm4, %v978_v55, %v684_v58  ;;  %853 = vpow2.f32 %v516_v59  ;;  %v495_v63 = vmin.f32 %v1027_v46, 0.0  ;;  %vm479_vm14 = vcmp.gt.f32.partialorder %v1027_v46, 0.0 }
 0x10e   : > { %v842_v0 = vpop.eup %841  ;;  %570 = vst [vmem:[%s1001_s24 + $0x10] sm:$0xff] %v554_v47  ;;  %v562_v3 = vsel %vm482_vm5, %v980_v56, %v692_v61  ;;  %855 = vpow2.f32 %v532_v62  ;;  %v503_v4 = vmin.f32 %v1029_v60, 0.0  ;;  %vm487_vm15 = vcmp.gt.f32.partialorder %v1029_v60, 0.0 }
 0x10f   : > { %v844_v5 = vpop.eup %843  ;;  %578 = vst [vmem:[%s1001_s24 + $0x50] sm:$0xff] %v562_v3  ;;  %v685_v6 = vadd.f32 -1.0, %v842_v0  ;;  %v518_v7 = vmul.f32 1.442695, %v495_v63 }
 0x110   : > { %v693_v55 = vadd.f32 -1.0, %v844_v5  ;;  %v534_v8 = vmul.f32 1.442695, %v503_v4 }
 0x111   : > { %v555_v9 = vsel %vm475_vm6, %v984_v1, %v685_v6  ;;  %857 = vpow2.f32 %v518_v7 }
 0x112   : > { %v846_v56 = vpop.eup %845  ;;  %571 = vst [vmem:[%s1001_s24 + $0x18] sm:$0xff] %v555_v9  ;;  %v563_v10 = vsel %vm483_vm7, %v986_v2, %v693_v55  ;;  %859 = vpow2.f32 %v534_v8 }
 0x113   : > { %v848_v13 = vpop.eup %847  ;;  %579 = vst [vmem:[%s1001_s24 + $0x58] sm:$0xff] %v563_v10  ;;  %v686_v14 = vadd.f32 -1.0, %v846_v56 }
 0x114   : > { %v694_v15 = vadd.f32 -1.0, %v848_v13 }
 0x115   : > { %v556_v16 = vsel %vm476_vm8, %v990_v11, %v686_v14 }
 0x116   : > { %v850_v1 = vpop.eup %849  ;;  %572 = vst [vmem:[%s1001_s24 + $0x20] sm:$0xff] %v556_v16  ;;  %v564_v17 = vsel %vm484_vm9, %v992_v12, %v694_v15 }
 0x117   : > { %v852_v18 = vpop.eup %851  ;;  %580 = vst [vmem:[%s1001_s24 + $0x60] sm:$0xff] %v564_v17  ;;  %v687_v2 = vadd.f32 -1.0, %v850_v1 }
 0x118   : > { %v695_v19 = vadd.f32 -1.0, %v852_v18 }
 0x119   : > { %v557_v20 = vsel %vm477_vm10, %v1003_v24, %v687_v2 }
 0x11a   : > { %v854_v11 = vpop.eup %853  ;;  %573 = vst [vmem:[%s1001_s24 + $0x28] sm:$0xff] %v557_v20  ;;  %v565_v21 = vsel %vm485_vm11, %v1005_v25, %v695_v19 }
 0x11b   : > { %v856_v22 = vpop.eup %855  ;;  %581 = vst [vmem:[%s1001_s24 + $0x68] sm:$0xff] %v565_v21  ;;  %v688_v12 = vadd.f32 -1.0, %v854_v11 }
 0x11c   : > { %v696_v23 = vadd.f32 -1.0, %v856_v22 }
 0x11d   : > { %v558_v26 = vsel %vm478_vm12, %v1015_v36, %v688_v12 }
 0x11e   : > { %v858_v24 = vpop.eup %857  ;;  %574 = vst [vmem:[%s1001_s24 + $0x30] sm:$0xff] %v558_v26  ;;  %v566_v27 = vsel %vm486_vm13, %v1017_v42, %v696_v23 }
 0x11f   : > { %v860_v28 = vpop.eup %859  ;;  %582 = vst [vmem:[%s1001_s24 + $0x70] sm:$0xff] %v566_v27  ;;  %v689_v29 = vadd.f32 -1.0, %v858_v24 }
 0x120   : > { %v697_v25 = vadd.f32 -1.0, %v860_v28 }
 0x121   : > { %v559_v30 = vsel %vm479_vm14, %v1027_v46, %v689_v29 }
 0x122   : > { %575 = vst [vmem:[%s1001_s24 + $0x38] sm:$0xff] %v559_v30  ;;  %v567_v31 = vsel %vm487_vm15, %v1029_v60, %v697_v25 }
 0x123   : > { %583 = vst [vmem:[%s1001_s24 + $0x78] sm:$0xff] %v567_v31 }
 0x124 PF: > { %s12_s9 = sadd.s32 1, %s867_s9  }
 0x125   : > { %p9_p4 = scmp.ge.s32.totalorder %s12_s9, 4  }
 0x127   :  { %11 = sbr.rel (!%p9_p4) target bundleno = 1 (0x1), region = 58 }

</bundles_post_ra>
